<compile_context>
chip_gen: v7x
topology: tpu7x:2x2x1
jax: 0.10.0
libtpu: 0.0.40
codegen_flags: <defaults>
</compile_context>

<pallas_src>
import math

import jax
import jax.numpy as jnp
import numpy as np
from jax.experimental import pallas as pl
from jax.experimental.pallas import tpu as pltpu


def _round_up(v, m):
    return (v + m - 1) // m * m


def _stable_sigmoid(v):
    # logistic(v) without overflow: exp is only applied to non-positive args.
    z = jnp.exp(-jnp.abs(v))
    inv = 1.0 / (1.0 + z)
    return jnp.where(v >= 0, inv, z * inv)


def kan_kernel(x_ref, qa_ref, qb_ref, qc_ref, w_ref, out_ref, a_ref):
    # x:   (TB, n)           input tile
    # qa:  (b, n)  = 1/q               (gaussian scale)
    # qb:  (b, n)  = -m/q              (gaussian shift)
    # qc:  (b, n)  = 1/(sqrt(2pi) q)   (gaussian normalizer)
    # w:   ((b+1)*n, n*slice) block-diagonal fused weight (Wbb*Wb blocks + Wc)
    # out: (TB, n*slice)
    # a:   (TB, (b+1)*n)      VMEM scratch: [phsi_0 | ... | phsi_{b-1} | silu]
    x = x_ref[...]                          # (TB, n)
    n = x.shape[1]
    b = qa_ref.shape[0]

    qa = qa_ref[...]                        # (b, n)
    qb = qb_ref[...]
    qc = qc_ref[...]

    # Gaussian basis slabs (b is small & static -> unrolled at trace time).
    for k in range(b):
        z = x * qa[k:k + 1, :] + qb[k:k + 1, :]            # (TB, n)
        a_ref[:, k * n:(k + 1) * n] = qc[k:k + 1, :] * jnp.exp(-0.5 * z * z)

    # SiLU slab (Wc is folded into the last n rows of the fused weight).
    a_ref[:, b * n:(b + 1) * n] = x * _stable_sigmoid(x)

    # Single MXU contraction -> lane-dense (TB, n*slice) output, no reshapes.
    out_ref[...] = jnp.dot(a_ref[...], w_ref[...],
                           preferred_element_type=jnp.float32)


def fold_params(m, q, wbb, wb, wc):
    """Host-side parameter folding (tiny, one-time).

    m: (b,), q: (n,b), wbb: (b,s), wb: (n,s), wc: (n,)
    returns qa, qb, qc: (b,n) and wbig: ((b+1)*n, n*s)
    """
    b = m.shape[0]
    n, s = wb.shape

    inv_q = (1.0 / q).T.astype(jnp.float32)                # (b, n)
    qa = inv_q
    qb = (-m[:, None]) * inv_q                             # (b, n)
    qc = inv_q / jnp.float32(math.sqrt(2.0 * math.pi))     # (b, n)

    eye = jnp.eye(n, dtype=jnp.float32)                    # (n, n)
    blocks = wbb[:, None, :] * wb[None, :, :]              # (b, n, s)  Wbb[k]*Wb[i]
    # wtop[k*n + i, i2*s + j] = delta(i,i2) * Wbb[k,j] * Wb[i,j]
    wtop = (eye[None, :, :, None] * blocks[:, :, None, :]).reshape(b * n, n * s)
    # wbot[i, i2*s + j] = delta(i,i2) * Wc[i]
    wbot = jnp.broadcast_to((eye * wc[:, None])[:, :, None], (n, n, s)).reshape(n, n * s)
    wbig = jnp.concatenate([wtop, wbot], axis=0)           # ((b+1)*n, n*s)
    return qa, qb, qc, wbig


def kan_forward(x, m, q, wbb, wb, wc, *, block_batch=512):
    """x: (batch, n) f32; params as in fold_params. Returns (batch, n*slice)."""
    batch, n = x.shape
    b = m.shape[0]
    s = wbb.shape[1]
    k_dim = (b + 1) * n

    qa, qb, qc, wbig = fold_params(m, q, wbb, wb, wc)

    # Batch tile: multiple of 8 sublanes, capped by block_batch; pad batch.
    tb = min(_round_up(block_batch, 8), _round_up(batch, 8))
    bp = _round_up(batch, tb)
    if bp != batch:
        x = jnp.pad(x, ((0, bp - batch), (0, 0)))
    grid = (bp // tb,)

    out = pl.pallas_call(
        kan_kernel,
        out_shape=jax.ShapeDtypeStruct((bp, n * s), jnp.float32),
        grid=grid,
        in_specs=[
            pl.BlockSpec((tb, n), lambda i: (i, 0)),        # x tile
            pl.BlockSpec((b, n), lambda i: (0, 0)),         # qa (constant block)
            pl.BlockSpec((b, n), lambda i: (0, 0)),         # qb
            pl.BlockSpec((b, n), lambda i: (0, 0)),         # qc
            pl.BlockSpec((k_dim, n * s), lambda i: (0, 0)),  # fused weight
        ],
        out_specs=pl.BlockSpec((tb, n * s), lambda i: (i, 0)),
        scratch_shapes=[pltpu.VMEM((tb, k_dim), jnp.float32)],
        compiler_params=pltpu.CompilerParams(
            dimension_semantics=("parallel",),      # megacore split on v7x
            vmem_limit_bytes=32 * 1024 * 1024,
        ),
    )(x, qa, qb, qc, wbig)
    return out[:batch]


def kan_reference(x, m, q, wbb, wb, wc):
    """Pure-JAX reference mirroring the PyTorch forward (exact f32 math)."""
    kn = math.sqrt(2.0 * math.pi)
    xe = x[:, :, None]                                               # (B, n, 1)
    phsi = jnp.exp(-0.5 * ((xe - m[None, None, :]) / q[None, :, :]) ** 2) \
        / (kn * q[None, :, :])                                       # (B, n, b)
    Bm = jnp.sum(phsi[:, :, :, None] * wbb[None, None, :, :], axis=2)  # (B, n, s)
    silu = x * _stable_sigmoid(x)
    S = silu * wc[None, :]                                           # (B, n)
    res = S[:, :, None] + Bm * wb[None, :, :]
    return res.reshape(x.shape[0], -1)


if __name__ == "__main__":
    # Shapes consistent with the module: in_=16, slice_=32, b=5.
    # batch=100 exercises padding (to 128) and a 4-step batch grid with tb=32.
    in_, slice_, b, batch = 16, 32, 5, 100

    key = jax.random.PRNGKey(0)
    k_wbb, k_wb, k_wc, k_x = jax.random.split(key, 4)

    inv_sqrt_slice = 1.0 / math.sqrt(slice_)
    wbb = jax.random.uniform(k_wbb, (b, slice_), jnp.float32) * inv_sqrt_slice
    wb = jax.random.uniform(k_wb, (in_, slice_), jnp.float32) * inv_sqrt_slice
    wc = jax.random.uniform(k_wc, (in_,), jnp.float32)          # PyTorch Wc[:, 0]
    q = jnp.ones((in_, b), jnp.float32)
    m = (jnp.arange(b, dtype=jnp.float32) - b // 2) * math.sqrt(b)   # (b,)

    x = jax.random.normal(k_x, (batch, in_), jnp.float32)

    out = kan_forward(x, m, q, wbb, wb, wc, block_batch=32)
    out = jax.block_until_ready(out)

    ref = kan_reference(x, m, q, wbb, wb, wc)
    np.testing.assert_allclose(np.asarray(out), np.asarray(ref), rtol=2e-5, atol=2e-5)
    assert out.shape == (batch, in_ * slice_)

    print("KERNEL_OK")
</pallas_src>

<mosaic_0001>
module attributes {stable_mosaic.version = 11 : i64} {
  func.func @kan_kernel(%arg0: i32, %arg1: memref<32x16xf32, #tpu.memory_space<vmem>>, %arg2: memref<5x16xf32, #tpu.memory_space<vmem>>, %arg3: memref<5x16xf32, #tpu.memory_space<vmem>>, %arg4: memref<5x16xf32, #tpu.memory_space<vmem>>, %arg5: memref<96x512xf32, #tpu.memory_space<vmem>>, %arg6: memref<32x512xf32, #tpu.memory_space<vmem>>, %arg7: memref<32x96xf32, #tpu.memory_space<vmem>>) attributes {dimension_semantics = [#tpu.dimension_semantics<parallel>], iteration_bounds = array<i64: 4>, scalar_prefetch = 0 : i64, scratch_operands = 1 : i64, tpu.core_type = #tpu.core_type<tc>, window_params = [{transform_indices = @transform_0, window_bounds = array<i64: 32, 16>}, {pipeline_mode = #tpu.pipeline_mode<synchronous>, transform_indices = @transform_1, window_bounds = array<i64: 5, 16>}, {pipeline_mode = #tpu.pipeline_mode<synchronous>, transform_indices = @transform_2, window_bounds = array<i64: 5, 16>}, {pipeline_mode = #tpu.pipeline_mode<synchronous>, transform_indices = @transform_3, window_bounds = array<i64: 5, 16>}, {pipeline_mode = #tpu.pipeline_mode<synchronous>, transform_indices = @transform_4, window_bounds = array<i64: 96, 512>}, {transform_indices = @transform_5, window_bounds = array<i64: 32, 512>}]} {
    %c0 = arith.constant 0 : index
    %c0_0 = arith.constant 0 : index
    %0 = vector.load %arg1[%c0, %c0_0] : memref<32x16xf32, #tpu.memory_space<vmem>>, vector<32x16xf32>
    %c0_1 = arith.constant 0 : index
    %c0_2 = arith.constant 0 : index
    %1 = vector.load %arg2[%c0_1, %c0_2] : memref<5x16xf32, #tpu.memory_space<vmem>>, vector<5x16xf32>
    %c0_3 = arith.constant 0 : index
    %c0_4 = arith.constant 0 : index
    %2 = vector.load %arg3[%c0_3, %c0_4] : memref<5x16xf32, #tpu.memory_space<vmem>>, vector<5x16xf32>
    %c0_5 = arith.constant 0 : index
    %c0_6 = arith.constant 0 : index
    %3 = vector.load %arg4[%c0_5, %c0_6] : memref<5x16xf32, #tpu.memory_space<vmem>>, vector<5x16xf32>
    %4 = vector.extract_strided_slice %1 {offsets = [0, 0], sizes = [1, 16], strides = [1, 1]} : vector<5x16xf32> to vector<1x16xf32>
    %5 = vector.broadcast %4 : vector<1x16xf32> to vector<32x16xf32>
    %6 = arith.mulf %0, %5 : vector<32x16xf32>
    %7 = vector.extract_strided_slice %2 {offsets = [0, 0], sizes = [1, 16], strides = [1, 1]} : vector<5x16xf32> to vector<1x16xf32>
    %8 = vector.broadcast %7 : vector<1x16xf32> to vector<32x16xf32>
    %9 = arith.addf %6, %8 : vector<32x16xf32>
    %10 = vector.extract_strided_slice %3 {offsets = [0, 0], sizes = [1, 16], strides = [1, 1]} : vector<5x16xf32> to vector<1x16xf32>
    %cst = arith.constant -5.000000e-01 : f32
    %11 = vector.broadcast %cst : f32 to vector<32x16xf32>
    %12 = arith.mulf %11, %9 : vector<32x16xf32>
    %13 = arith.mulf %12, %9 : vector<32x16xf32>
    %14 = math.exp %13 : vector<32x16xf32>
    %15 = vector.broadcast %10 : vector<1x16xf32> to vector<32x16xf32>
    %16 = arith.mulf %15, %14 : vector<32x16xf32>
    %c0_7 = arith.constant 0 : index
    %c0_8 = arith.constant 0 : index
    %17 = vector.load %arg7[%c0_7, %c0_8] : memref<32x96xf32, #tpu.memory_space<vmem>>, vector<32x16xf32>
    tpu.vector_store %arg7[%c0_7, %c0_8], %16 {strides = array<i32>} : memref<32x96xf32, #tpu.memory_space<vmem>>, vector<32x16xf32>,
    %18 = vector.extract_strided_slice %1 {offsets = [1, 0], sizes = [1, 16], strides = [1, 1]} : vector<5x16xf32> to vector<1x16xf32>
    %19 = vector.broadcast %18 : vector<1x16xf32> to vector<32x16xf32>
    %20 = arith.mulf %0, %19 : vector<32x16xf32>
    %21 = vector.extract_strided_slice %2 {offsets = [1, 0], sizes = [1, 16], strides = [1, 1]} : vector<5x16xf32> to vector<1x16xf32>
    %22 = vector.broadcast %21 : vector<1x16xf32> to vector<32x16xf32>
    %23 = arith.addf %20, %22 : vector<32x16xf32>
    %24 = vector.extract_strided_slice %3 {offsets = [1, 0], sizes = [1, 16], strides = [1, 1]} : vector<5x16xf32> to vector<1x16xf32>
    %cst_9 = arith.constant -5.000000e-01 : f32
    %25 = vector.broadcast %cst_9 : f32 to vector<32x16xf32>
    %26 = arith.mulf %25, %23 : vector<32x16xf32>
    %27 = arith.mulf %26, %23 : vector<32x16xf32>
    %28 = math.exp %27 : vector<32x16xf32>
    %29 = vector.broadcast %24 : vector<1x16xf32> to vector<32x16xf32>
    %30 = arith.mulf %29, %28 : vector<32x16xf32>
    %c0_10 = arith.constant 0 : index
    %c16 = arith.constant 16 : index
    %31 = vector.load %arg7[%c0_10, %c16] : memref<32x96xf32, #tpu.memory_space<vmem>>, vector<32x16xf32>
    tpu.vector_store %arg7[%c0_10, %c16], %30 {strides = array<i32>} : memref<32x96xf32, #tpu.memory_space<vmem>>, vector<32x16xf32>,
    %32 = vector.extract_strided_slice %1 {offsets = [2, 0], sizes = [1, 16], strides = [1, 1]} : vector<5x16xf32> to vector<1x16xf32>
    %33 = vector.broadcast %32 : vector<1x16xf32> to vector<32x16xf32>
    %34 = arith.mulf %0, %33 : vector<32x16xf32>
    %35 = vector.extract_strided_slice %2 {offsets = [2, 0], sizes = [1, 16], strides = [1, 1]} : vector<5x16xf32> to vector<1x16xf32>
    %36 = vector.broadcast %35 : vector<1x16xf32> to vector<32x16xf32>
    %37 = arith.addf %34, %36 : vector<32x16xf32>
    %38 = vector.extract_strided_slice %3 {offsets = [2, 0], sizes = [1, 16], strides = [1, 1]} : vector<5x16xf32> to vector<1x16xf32>
    %cst_11 = arith.constant -5.000000e-01 : f32
    %39 = vector.broadcast %cst_11 : f32 to vector<32x16xf32>
    %40 = arith.mulf %39, %37 : vector<32x16xf32>
    %41 = arith.mulf %40, %37 : vector<32x16xf32>
    %42 = math.exp %41 : vector<32x16xf32>
    %43 = vector.broadcast %38 : vector<1x16xf32> to vector<32x16xf32>
    %44 = arith.mulf %43, %42 : vector<32x16xf32>
    %c0_12 = arith.constant 0 : index
    %c32 = arith.constant 32 : index
    %45 = vector.load %arg7[%c0_12, %c32] : memref<32x96xf32, #tpu.memory_space<vmem>>, vector<32x16xf32>
    tpu.vector_store %arg7[%c0_12, %c32], %44 {strides = array<i32>} : memref<32x96xf32, #tpu.memory_space<vmem>>, vector<32x16xf32>,
    %46 = vector.extract_strided_slice %1 {offsets = [3, 0], sizes = [1, 16], strides = [1, 1]} : vector<5x16xf32> to vector<1x16xf32>
    %47 = vector.broadcast %46 : vector<1x16xf32> to vector<32x16xf32>
    %48 = arith.mulf %0, %47 : vector<32x16xf32>
    %49 = vector.extract_strided_slice %2 {offsets = [3, 0], sizes = [1, 16], strides = [1, 1]} : vector<5x16xf32> to vector<1x16xf32>
    %50 = vector.broadcast %49 : vector<1x16xf32> to vector<32x16xf32>
    %51 = arith.addf %48, %50 : vector<32x16xf32>
    %52 = vector.extract_strided_slice %3 {offsets = [3, 0], sizes = [1, 16], strides = [1, 1]} : vector<5x16xf32> to vector<1x16xf32>
    %cst_13 = arith.constant -5.000000e-01 : f32
    %53 = vector.broadcast %cst_13 : f32 to vector<32x16xf32>
    %54 = arith.mulf %53, %51 : vector<32x16xf32>
    %55 = arith.mulf %54, %51 : vector<32x16xf32>
    %56 = math.exp %55 : vector<32x16xf32>
    %57 = vector.broadcast %52 : vector<1x16xf32> to vector<32x16xf32>
    %58 = arith.mulf %57, %56 : vector<32x16xf32>
    %c0_14 = arith.constant 0 : index
    %c48 = arith.constant 48 : index
    %59 = vector.load %arg7[%c0_14, %c48] : memref<32x96xf32, #tpu.memory_space<vmem>>, vector<32x16xf32>
    tpu.vector_store %arg7[%c0_14, %c48], %58 {strides = array<i32>} : memref<32x96xf32, #tpu.memory_space<vmem>>, vector<32x16xf32>,
    %60 = vector.extract_strided_slice %1 {offsets = [4, 0], sizes = [1, 16], strides = [1, 1]} : vector<5x16xf32> to vector<1x16xf32>
    %61 = vector.broadcast %60 : vector<1x16xf32> to vector<32x16xf32>
    %62 = arith.mulf %0, %61 : vector<32x16xf32>
    %63 = vector.extract_strided_slice %2 {offsets = [4, 0], sizes = [1, 16], strides = [1, 1]} : vector<5x16xf32> to vector<1x16xf32>
    %64 = vector.broadcast %63 : vector<1x16xf32> to vector<32x16xf32>
    %65 = arith.addf %62, %64 : vector<32x16xf32>
    %66 = vector.extract_strided_slice %3 {offsets = [4, 0], sizes = [1, 16], strides = [1, 1]} : vector<5x16xf32> to vector<1x16xf32>
    %cst_15 = arith.constant -5.000000e-01 : f32
    %67 = vector.broadcast %cst_15 : f32 to vector<32x16xf32>
    %68 = arith.mulf %67, %65 : vector<32x16xf32>
    %69 = arith.mulf %68, %65 : vector<32x16xf32>
    %70 = math.exp %69 : vector<32x16xf32>
    %71 = vector.broadcast %66 : vector<1x16xf32> to vector<32x16xf32>
    %72 = arith.mulf %71, %70 : vector<32x16xf32>
    %c0_16 = arith.constant 0 : index
    %c64 = arith.constant 64 : index
    %73 = vector.load %arg7[%c0_16, %c64] : memref<32x96xf32, #tpu.memory_space<vmem>>, vector<32x16xf32>
    tpu.vector_store %arg7[%c0_16, %c64], %72 {strides = array<i32>} : memref<32x96xf32, #tpu.memory_space<vmem>>, vector<32x16xf32>,
    %74 = math.absf %0 : vector<32x16xf32>
    %cst_17 = arith.constant 0.000000e+00 : f32
    %75 = vector.broadcast %cst_17 : f32 to vector<32x16xf32>
    %76 = arith.subf %75, %74 : vector<32x16xf32>
    %77 = math.exp %76 : vector<32x16xf32>
    %cst_18 = arith.constant 1.000000e+00 : f32
    %78 = vector.broadcast %cst_18 : f32 to vector<32x16xf32>
    %79 = arith.addf %78, %77 : vector<32x16xf32>
    %cst_19 = arith.constant 1.000000e+00 : f32
    %80 = vector.broadcast %cst_19 : f32 to vector<32x16xf32>
    %81 = arith.divf %80, %79 : vector<32x16xf32>
    %cst_20 = arith.constant 0.000000e+00 : f32
    %82 = vector.broadcast %cst_20 : f32 to vector<32x16xf32>
    %83 = arith.cmpf oge, %0, %82 : vector<32x16xf32>
    %84 = arith.mulf %77, %81 : vector<32x16xf32>
    %85 = arith.select %83, %81, %84 : vector<32x16xi1>, vector<32x16xf32>
    %86 = arith.mulf %0, %85 : vector<32x16xf32>
    %c0_21 = arith.constant 0 : index
    %c80 = arith.constant 80 : index
    %87 = vector.load %arg7[%c0_21, %c80] : memref<32x96xf32, #tpu.memory_space<vmem>>, vector<32x16xf32>
    tpu.vector_store %arg7[%c0_21, %c80], %86 {strides = array<i32>} : memref<32x96xf32, #tpu.memory_space<vmem>>, vector<32x16xf32>,
    %c0_22 = arith.constant 0 : index
    %c0_23 = arith.constant 0 : index
    %88 = vector.load %arg7[%c0_22, %c0_23] : memref<32x96xf32, #tpu.memory_space<vmem>>, vector<32x96xf32>
    %c0_24 = arith.constant 0 : index
    %c0_25 = arith.constant 0 : index
    %89 = vector.load %arg5[%c0_24, %c0_25] : memref<96x512xf32, #tpu.memory_space<vmem>>, vector<96x512xf32>
    %cst_26 = arith.constant dense<0.000000e+00> : vector<32x512xf32>
    %90 = tpu.matmul %88, %89, %cst_26 {dimension_numbers = #tpu.dot_dimension_numbers<[1], [0], [0], [1], [0, 0, 1, 1], [], []>} : vector<32x96xf32>, vector<96x512xf32>, vector<32x512xf32> -> vector<32x512xf32>
    %c0_27 = arith.constant 0 : index
    %c0_28 = arith.constant 0 : index
    %91 = vector.load %arg6[%c0_27, %c0_28] : memref<32x512xf32, #tpu.memory_space<vmem>>, vector<32x512xf32>
    tpu.vector_store %arg6[%c0_27, %c0_28], %90 {strides = array<i32>} : memref<32x512xf32, #tpu.memory_space<vmem>>, vector<32x512xf32>,
    return
  }
  func.func @transform_0(%arg0: i32) -> (i32, i32) {
    %c0_i32 = arith.constant 0 : i32
    %c0_i32_0 = arith.constant 0 : i32
    return %arg0, %c0_i32 : i32, i32
  }
  func.func @transform_1(%arg0: i32) -> (i32, i32) {
    %c0_i32 = arith.constant 0 : i32
    %c0_i32_0 = arith.constant 0 : i32
    %c0_i32_1 = arith.constant 0 : i32
    return %c0_i32, %c0_i32_0 : i32, i32
  }
  func.func @transform_2(%arg0: i32) -> (i32, i32) {
    %c0_i32 = arith.constant 0 : i32
    %c0_i32_0 = arith.constant 0 : i32
    %c0_i32_1 = arith.constant 0 : i32
    return %c0_i32, %c0_i32_0 : i32, i32
  }
  func.func @transform_3(%arg0: i32) -> (i32, i32) {
    %c0_i32 = arith.constant 0 : i32
    %c0_i32_0 = arith.constant 0 : i32
    %c0_i32_1 = arith.constant 0 : i32
    return %c0_i32, %c0_i32_0 : i32, i32
  }
  func.func @transform_4(%arg0: i32) -> (i32, i32) {
    %c0_i32 = arith.constant 0 : i32
    %c0_i32_0 = arith.constant 0 : i32
    %c0_i32_1 = arith.constant 0 : i32
    return %c0_i32, %c0_i32_0 : i32, i32
  }
  func.func @transform_5(%arg0: i32) -> (i32, i32) {
    %c0_i32 = arith.constant 0 : i32
    %c0_i32_0 = arith.constant 0 : i32
    return %arg0, %c0_i32 : i32, i32
  }
}

</mosaic_0001>

<bundles_post_ra>
// kernel: tpu_custom_call.1
= control target key start
LH: loop header
LB: loop body
LE: loop exit
PB: predicated region body
PF: predicated region fallthrough
CT: control target
= control target key end

     0   :  { %10 = vsyncpa [#allocation4], 0  ;;  %s1706_s0 = inlined_call_operand.vmem [shape: f32[128,16], index: 0, kind: input, shape index: {}]   ;;  %s1707_s1 = inlined_call_operand.vmem [shape: f32[5,16], index: 1, kind: input, shape index: {}]   ;;  %s1708_s2 = inlined_call_operand.vmem [shape: f32[5,16], index: 2, kind: input, shape index: {}]   ;;  %s1709_s3 = inlined_call_operand.vmem [shape: f32[5,16], index: 3, kind: input, shape index: {}]   ;;  %s1710_s4 = inlined_call_operand.hbm [shape: f32[96,512], index: 4, kind: input, shape index: {}]   ;;  %s1711_s5 = inlined_call_operand.hbm [shape: f32[128,512], index: 5, kind: output, shape index: {}]  }
   0x1   :  { %11 = vsyncpa [#allocation5], 0 }
   0x2   :  { %13 = vsyncpa [#allocation5 + $0x1], 0  ;;  %s1275_s18 = smov 0   ;;  %s1277_s19 = smov 0  }
   0x3   :  { %s1279_s20 = smov 0   ;;  %s1281_s21 = smov 0  }
   0x4 LB: > { %s1296_s22 = sadd.s32 4294967295, %s1232_s21   ;;  %s950_s23 = sadd.s32 4294967294, %s1232_s21   ;;  %s1232_s21 = sphi %s1281_s21, %s1727_s21   ;;  %s1228_s20 = sphi %s1279_s20, %s1726_s20   ;;  %s1224_s19 = sphi %s1277_s19, %s1725_s19   ;;  %s1220_s18 = sphi %s1275_s18, %s1724_s18  }
   0x5   : > { %s1300_s24 = sadd.s32 1, %s1232_s21   ;;  %s136_s25 = sadd.s32 1, %s1228_s20 }
   0x6   : > { %s133_s26 = ssub.s32 %s1232_s21, %s1300_s24  ;;  %p146_p0 = scmp.ne.s32.totalorder %s1228_s20, %s1224_s19 }
   0x7   : > { %p134_p1 = scmp.eq.s32.totalorder %s133_s26, 0  ;;  %p147_p2 = scmp.eq.s32.totalorder %s1296_s22, 3 }
   0x8   : > { %p152_p3 = scmp.ne.s32.totalorder %s1224_s19, %s1220_s18  ;;  %p153_p4 = scmp.eq.s32.totalorder %s950_s23, 3 }
   0x9   : > { %s1311_s27 = scalar_select %p134_p1, %s1228_s20, %s136_s25  }
   0xa   : > { %p1313_p5 = por %p147_p2, %p146_p0  ;;  %p1317_p6 = por %p153_p4, %p152_p3 }
   0xb   : > { %p951_p7 = scmp.ge.s32.totalorder %s1232_s21, 1  ;;  %p160_p8 = scmp.lt.s32.totalorder %s1232_s21, 5 }
   0xc   : > { %s1715_s28 = scalar_select %p1313_p5, 1, 0 }
   0xd   : > { %s1716_s29 = scalar_select %p1317_p6, 1, 0 }
   0xe   : > { %p1712_p9 = scmp.eq.s32.totalorder %s1296_s22, 0  ;;  %p1324_p10 = pnand %p951_p7, %p160_p8 }
   0xf   : > { %s1234_s6 = smov [#allocation3]   ;;  %s1138_s11 = scalar_lea.hbm %s1710_s4, 6144 }
  0x10   : > { %s1717_s30 = scalar_select %p1324_p10, 1, 0 }
  0x11   : > { %s181_s7 = sshll.u32 %s1234_s6, 4  ;;  %p1029_p11 = pneg %p1324_p10  ;;  %s182_s7 = int_to_ptr.vmem [resolvable:$true] %s181_s7 }
  0x12   : > { %p1139_p13 = scmp.ne.s32.totalorder %s1710_s4, %s1138_s11  ;;  %p1145_p3 = scmp.lt.u32.totalorder %s1138_s11, %s1710_s4 }
  0x13   : > { %p1332_p12 = pnand %p1712_p9, %p1029_p11 }
  0x15   : > { %p1140_p0 = pneg %p1332_p12 }
  0x17   : > { %p1141_p1 = pnand %p1140_p0, %p1139_p13 }
  0x19   : > { %p1142_p2 = pneg %p1141_p1 }
  0x1b   : > { %p1147_p4 = pnand %p1145_p3, %p1142_p2 }
  0x1d   : > { %1150 = shalt.err (!%p1147_p4)
}
  0x1e   : > { %s1151_s16 = scalar_lea.vmem %s182_s7, 6144  ;;  %p1159_p9 = scmp.lt.s32.totalorder %s182_s7, %s182_s7 }
  0x1f   : > { %p1152_p7 = scmp.ne.s32.totalorder %s182_s7, %s1151_s16  ;;  %p1160_p6 = scmp.lt.s32.totalorder %s1151_s16, %s1151_s16 }
  0x21   : > { %p1154_p8 = pnand %p1152_p7, %p1140_p0  ;;  %p1161_p5 = por %p1160_p6, %p1159_p9 }
  0x23   : > { %p1155_p11 = pneg %p1154_p8 }
  0x25   : > { %p1162_p10 = pnand %p1161_p5, %p1155_p11 }
  0x27   : > { %1165 = shalt.err (!%p1162_p10)
}
  0x28   : > { %s1235_s17 = smov 512   ;;  %s1236_s23 = smov 32  }
  0x29   : > { %1032 = dma.hbm_to_vmem [thread:$0]  (!%p1332_p12), %s1710_s4, 6144, %s182_s7, [#allocation4], %s1235_s17, %s1235_s17, %s1236_s23  }
  0x2a   : > { %p1719_p13 = scmp.ne.s32.totalorder %s1717_s30, 0 }
  0x2b   : > { %p1720_p1 = scmp.eq.s32.totalorder (!%p1719_p13), %s1296_s22, 0 }
  0x2c   : > { %206 = sbr.rel (%p1719_p13) target bundleno = 474 (0x1da), region = 40 }
  0x33   : > { %1211 = dma.done.wait (%p1720_p1), [#allocation4], 6144   ;;  %p1721_p0 = pmov %p1720_p1 }
  0x34   : > { %s957_s6 = sshll.u32 %s1296_s22, 2  ;;  %v248_v0 = vlaneseq  ;;  %v1378_v7 = vld [vmem:[%s1707_s1] sm:$0x1f]  ;;  %s1237_s16 = smov 48   ;;  %vm288_vm3 = vcmask 130048   ;;  %vm349_vm5 = vcmask 261248  }
  0x35   : > { %1213 = vsyncadd (%p1721_p0), [#allocation4], 4294961152  ;;  %p235_p5 = scmp.lt.s32.totalorder %s957_s6, 15  ;;  %v1383_v8 = vld [vmem:[%s1708_s2] sm:$0x1f]  ;;  %s1238_s17 = smov 16  }
  0x36   : > { %v1359_v1 = vshrl.u32 %v248_v0, 7  ;;  %v1388_v9 = vld [vmem:[%s1709_s3] sm:$0x1f]  ;;  %s1239_s23 = smov 64   ;;  %s1240_s25 = smov 32   ;;  %vm410_vm6 = vcmask 392448  }
  0x37   : > { %s1729_s6 = smov (!%p235_p5, %s957_s6), 15  ;;  %s1241_s26 = smov 80   ;;  %vm471_vm7 = vcmask 523648   ;;  %vm532_vm8 = vcmask 654848   ;;  %vm597_vm9 = vcmask 786048   ;;  %vm654_vm10 = vcmask 785408  }
  0x38   : > { %v417_v2 = vsub.s32 3, %v1359_v1  ;;  %v295_v3 = vsub.s32 1, %v1359_v1  ;;  %s958_s7 = sshll.u32 %s1729_s6, 3  ;;  %v478_v4 = vsub.s32 4, %v1359_v1  ;;  %v1370_v5 = vsub.s32 2, %v1359_v1  ;;  %s231_s6 = sand.u32 1, %s1224_s19  }
  0x39   : > { %s1367_s9 = scalar_lea.vmem %s1706_s0, %s958_s7  ;;  %s956_s7 = sshll.u32 %s231_s6, 7 }
  0x3a   : > { %v1373_v6 = vld [vmem:[%s1367_s9] sm:$0xff]  ;;  %v1391_v10 = vrot.slane %v1378_v7, %v417_v2  ;;  %v1394_v11 = vrot.slane %v1383_v8, %v417_v2  ;;  %v1397_v12 = vrot.slane %v1378_v7, %v295_v3  ;;  %v1400_v13 = vrot.slane %v1383_v8, %v295_v3  ;;  %v1403_v14 = vld [vmem:[%s1367_s9 + $0x8] sm:$0xff]  ;;  %v1423_v21 = vld [vmem:[%s1367_s9 + $0x10] sm:$0xff]  ;;  %s1635_s30 = scalar_lea.vmem [#allocation6], %s956_s7  ;;  %s974_s8 = sshll.u32 %s1296_s22, 11 }
  0x3b   : > { %v1406_v15 = vrot.slane %v1378_v7, %v478_v4  ;;  %v1409_v16 = vrot.slane %v1383_v8, %v478_v4  ;;  %v1414_v18 = vrot.slane %v1388_v9, %v417_v2  ;;  %v1420_v20 = vrot.slane %v1378_v7, %v1370_v5  ;;  %s1654_s12 = scalar_lea.hbm %s1711_s5, %s974_s8  ;;  %s1664_s22 = scalar_lea.sflag [#allocation5], %s231_s6 }
  0x3c   : > { %v419_v17 = vmul.f32 %v1391_v10, %v1373_v6  ;;  %v297_v19 = vmul.f32 %v1397_v12, %v1373_v6  ;;  %v1426_v22 = vrot.slane %v1388_v9, %v295_v3  ;;  %v1432_v24 = vrot.slane %v1383_v8, %v1370_v5  ;;  %p1722_p9 = scmp.ne.s32.totalorder %s1715_s28, 0  ;;  %s1243_s14 = smov [#allocation6]  }
  0x3d   : > { %v480_v23 = vmul.f32 %v1406_v15, %v1373_v6  ;;  %v420_v25 = vmul.f32 %v1391_v10, %v1403_v14  ;;  %v358_v28 = vmul.f32 %v1420_v20, %v1373_v6  ;;  %v298_v29 = vmul.f32 %v1397_v12, %v1403_v14  ;;  %s1170_s15 = sshll.u32 %s1243_s14, 4  ;;  %s1171_s15 = int_to_ptr.vmem [resolvable:$false] %s1170_s15 }
  0x3e   : > { %v427_v26 = vadd.f32 %v1394_v11, %v419_v17  ;;  %v305_v27 = vadd.f32 %v1400_v13, %v297_v19  ;;  %v299_v32 = vmul.f32 %v1397_v12, %v1423_v21  ;;  %v359_v33 = vmul.f32 %v1420_v20, %v1403_v14 }
  0x3f   : > { %v488_v30 = vadd.f32 %v1409_v16, %v480_v23  ;;  %v428_v31 = vadd.f32 %v1394_v11, %v420_v25  ;;  %v366_v36 = vadd.f32 %v1432_v24, %v358_v28  ;;  %v306_v37 = vadd.f32 %v1400_v13, %v298_v29 }
  0x40   : > { %v431_v34 = vmul.f32 -0.5, %v427_v26  ;;  %v309_v35 = vmul.f32 -0.5, %v305_v27  ;;  %v307_v40 = vadd.f32 %v1400_v13, %v299_v32  ;;  %v367_v41 = vadd.f32 %v1432_v24, %v359_v33 }
  0x41   : > { %v492_v38 = vmul.f32 -0.5, %v488_v30  ;;  %v432_v39 = vmul.f32 -0.5, %v428_v31  ;;  %v370_v44 = vmul.f32 -0.5, %v366_v36  ;;  %v310_v45 = vmul.f32 -0.5, %v306_v37 }
  0x42   : > { %v435_v42 = vmul.f32 %v431_v34, %v427_v26  ;;  %v313_v43 = vmul.f32 %v309_v35, %v305_v27  ;;  %v311_v48 = vmul.f32 -0.5, %v307_v40  ;;  %v371_v49 = vmul.f32 -0.5, %v367_v41 }
  0x43   : > { %v496_v46 = vmul.f32 %v492_v38, %v488_v30  ;;  %v436_v47 = vmul.f32 %v432_v39, %v428_v31  ;;  %v374_v52 = vmul.f32 %v370_v44, %v366_v36  ;;  %v314_v53 = vmul.f32 %v310_v45, %v306_v37 }
  0x44   : > { %v439_v50 = vmul.f32 1.442695, %v435_v42  ;;  %v317_v51 = vmul.f32 1.442695, %v313_v43  ;;  %v1453_v55 = vrot.slane %v1388_v9, %v478_v4  ;;  %v315_v56 = vmul.f32 %v311_v48, %v307_v40  ;;  %v1465_v4 = vld [vmem:[%s1367_s9 + $0x18] sm:$0xff]  ;;  %s876_s9 = sshll.u32 %s1635_s30, 4  ;;  %s1656_s9 = int_to_ptr.vmem [resolvable:$true] %s876_s9 }
  0x45   : > { %v500_v54 = vmul.f32 1.442695, %v496_v46  ;;  %v375_v57 = vmul.f32 %v371_v49, %v367_v41  ;;  %v378_v58 = vmul.f32 1.442695, %v374_v52  ;;  %v441_v59 = vmul.f32 1.442695, %v436_v47  ;;  %p1173_p2 = scmp.lt.s32.totalorder %s1656_s9, %s1171_s15 }
  0x46   : > { %1082 = vpow2.f32 %v439_v50  ;;  %v360_v60 = vmul.f32 %v1420_v20, %v1423_v21  ;;  %v319_v61 = vmul.f32 1.442695, %v314_v53  ;;  %v321_v62 = vmul.f32 1.442695, %v315_v56  ;;  %s1166_s13 = scalar_lea.vmem %s1656_s9, 2048 }
  0x47   : > { %1084 = vpow2.f32 %v317_v51  ;;  %v481_v63 = vmul.f32 %v1406_v15, %v1403_v14  ;;  %v482_v2 = vmul.f32 %v1406_v15, %v1423_v21  ;;  %v421_v3 = vmul.f32 %v1391_v10, %v1423_v21  ;;  %p1167_p6 = scmp.ne.s32.totalorder %s1656_s9, %s1166_s13 }
  0x48   : > { %1086 = vpow2.f32 %v500_v54  ;;  %v368_v0 = vadd.f32 %v1432_v24, %v360_v60  ;;  %v380_v17 = vmul.f32 1.442695, %v375_v57  ;;  %v537_v23 = vand.u32 2147483647, %v1373_v6 }
  0x49   : > { %1088 = vpow2.f32 %v378_v58  ;;  %v489_v19 = vadd.f32 %v1409_v16, %v481_v63  ;;  %v490_v26 = vadd.f32 %v1409_v16, %v482_v2  ;;  %v429_v27 = vadd.f32 %v1394_v11, %v421_v3  ;;  %p1168_p10 = pnand %p1167_p6, %p1722_p9 }
  0x4a   : > { %1090 = vpow2.f32 %v441_v59  ;;  %v372_v25 = vmul.f32 -0.5, %v368_v0  ;;  %v541_v29 = vsub.f32 0.0, %v537_v23  ;;  %v300_v30 = vmul.f32 %v1397_v12, %v1465_v4 }
  0x4b   : > { %1092 = vpow2.f32 %v319_v61  ;;  %v493_v28 = vmul.f32 -0.5, %v489_v19  ;;  %v494_v32 = vmul.f32 -0.5, %v490_v26  ;;  %v433_v33 = vmul.f32 -0.5, %v429_v27  ;;  %p1169_p12 = pneg %p1168_p10 }
  0x4c   : > { %1094 = vpow2.f32 %v321_v62  ;;  %v376_v31 = vmul.f32 %v372_v25, %v368_v0  ;;  %v545_v35 = vmul.f32 1.442695, %v541_v29  ;;  %v308_v36 = vadd.f32 %v1400_v13, %v300_v30 }
  0x4d   : > { %1096 = vpow2.f32 %v380_v17  ;;  %v497_v34 = vmul.f32 %v493_v28, %v489_v19  ;;  %v498_v38 = vmul.f32 %v494_v32, %v490_v26  ;;  %v437_v39 = vmul.f32 %v433_v33, %v429_v27 }
  0x4e   : > { %v382_v37 = vmul.f32 1.442695, %v376_v31  ;;  %v422_v40 = vmul.f32 %v1391_v10, %v1465_v4  ;;  %1098 = vpow2.f32 %v545_v35  ;;  %v312_v42 = vmul.f32 -0.5, %v308_v36  ;;  %v607_v35 = vld [vmem:[#allocation3 + $0x8] sm:$0xff] }
  0x4f   : > { %v502_v41 = vmul.f32 1.442695, %v497_v34  ;;  %v538_v12 = vand.u32 2147483647, %v1403_v14  ;;  %v1479_v44 = vrot.slane %v1388_v9, %v1370_v5  ;;  %v504_v45 = vmul.f32 1.442695, %v498_v38 }
  0x50   : > { %v1083_v43 = vpop.eup %1082  ;;  %1100 = vpow2.f32 %v382_v37  ;;  %v430_v13 = vadd.f32 %v1394_v11, %v422_v40  ;;  %v443_v48 = vmul.f32 1.442695, %v437_v39  ;;  %v316_v51 = vmul.f32 %v312_v42, %v308_v36  ;;  %v611_v36 = vld [vmem:[#allocation3 + $0x28] sm:$0xff]  ;;  %v609_v40 = vld [vmem:[#allocation3 + $0x18] sm:$0xff]  ;;  %v606_v42 = vld [vmem:[#allocation3] sm:$0xff] }
  0x51   : > { %v1085_v46 = vpop.eup %1084  ;;  %v451_v47 = vmul.f32 %v1083_v43, %v1414_v18  ;;  %1102 = vpow2.f32 %v502_v41  ;;  %v542_v10 = vsub.f32 0.0, %v538_v12  ;;  %v539_v57 = vand.u32 2147483647, %v1423_v21  ;;  %v613_v41 = vld [vmem:[#allocation3 + $0x38] sm:$0xff]  ;;  %v610_v43 = vld [vmem:[#allocation3 + $0x20] sm:$0xff] }
  0x52   : > { %v1087_v49 = vpop.eup %1086  ;;  %v329_v50 = vmul.f32 %v1085_v46, %v1426_v22  ;;  %1104 = vpow2.f32 %v504_v45  ;;  %v434_v52 = vmul.f32 -0.5, %v430_v13  ;;  %v361_v59 = vmul.f32 %v1420_v20, %v1465_v4  ;;  %v608_v45 = vld [vmem:[#allocation3 + $0x10] sm:$0xff] }
  0x53   : > { %v1089_v53 = vpop.eup %1088  ;;  %459 = vrot.lane.b32.xlu1 %v451_v47, %s1237_s16  ;;  %v512_v5 = vmul.f32 %v1087_v49, %v1453_v55  ;;  %v547_v54 = vmul.f32 1.442695, %v542_v10  ;;  %1106 = vpow2.f32 %v443_v48  ;;  %v483_v60 = vmul.f32 %v1406_v15, %v1465_v4  ;;  %v619_v10 = vld [vmem:[#allocation3 + $0x68] sm:$0xff]  ;;  %v617_v49 = vld [vmem:[#allocation3 + $0x58] sm:$0xff] }
  0x54   : > { %v1091_v11 = vpop.eup %1090  ;;  %337 = vrot.lane.b32.xlu0 %v329_v50, %s1238_s17  ;;  %v390_v56 = vmul.f32 %v1089_v53, %v1479_v44  ;;  %v1494_v61 = vsub.s32 0, %v1359_v1  ;;  %v323_v63 = vmul.f32 1.442695, %v316_v51  ;;  %v438_v0 = vmul.f32 %v434_v52, %v430_v13  ;;  %v612_v13 = vld [vmem:[#allocation3 + $0x30] sm:$0xff] }
  0x55   : > { %v1093_v58 = vpop.eup %1092  ;;  %1108 = vpow2.f32 %v547_v54  ;;  %v543_v2 = vsub.f32 0.0, %v539_v57  ;;  %v452_v17 = vmul.f32 %v1091_v11, %v1414_v18  ;;  %v369_v19 = vadd.f32 %v1432_v24, %v361_v59  ;;  %v621_v54 = vld [vmem:[#allocation3 + $0x78] sm:$0xff]  ;;  %v614_v11 = vld [vmem:[#allocation3 + $0x40] sm:$0xff] }
  0x56   : > { %v1095_v62 = vpop.eup %1094  ;;  %v491_v20 = vadd.f32 %v1409_v16, %v483_v60  ;;  %v540_v15 = vand.u32 2147483647, %v1465_v4  ;;  %v330_v1 = vmul.f32 %v1093_v58, %v1426_v22  ;;  %v445_v31 = vmul.f32 1.442695, %v438_v0  ;;  %v1533_v0 = vld [vmem:[#allocation3 + $0x88] sm:$0xff] }
  0x57   : > { %v1097_v3 = vpop.eup %1096  ;;  %520 = vrot.lane.b32.xlu1 %v512_v5, %s1239_s23  ;;  %v549_v23 = vmul.f32 1.442695, %v543_v2  ;;  %v373_v26 = vmul.f32 -0.5, %v369_v19  ;;  %v1508_v16 = vrot.slane %v1378_v7, %v1494_v61  ;;  %v331_v32 = vmul.f32 %v1095_v62, %v1426_v22  ;;  %v616_v62 = vld [vmem:[#allocation3 + $0x50] sm:$0xff] }
  0x58   : > { %398 = vrot.lane.b32.xlu0 %v390_v56, %s1240_s25  ;;  %v1503_v25 = vpop.eup %1098  ;;  %v495_v27 = vmul.f32 -0.5, %v491_v20  ;;  %v544_v28 = vsub.f32 0.0, %v540_v15  ;;  %v391_v38 = vmul.f32 %v1097_v3, %v1479_v44  ;;  %v1516_v7 = vrot.slane %v1383_v8, %v1494_v61  ;;  %v615_v8 = vld [vmem:[#allocation3 + $0x48] sm:$0xff]  ;;  %v618_v56 = vld [vmem:[#allocation3 + $0x60] sm:$0xff]  ;;  %v625_v15 = vld [vmem:[#allocation3 + $0x98] sm:$0xff] }
  0x59   : > { %v553_v30 = vadd.f32 1.0, %v1503_v25  ;;  %1110 = vpow2.f32 %v549_v23  ;;  %v377_v33 = vmul.f32 %v373_v26, %v369_v19  ;;  %vm565_vm0 = vcmp.ge.f32.partialorder %v1373_v6, 0.0 }
  0x5a   : > { %v1101_v29 = vpop.eup %1100  ;;  %1112 = vpow2.f32 %v323_v63  ;;  %v551_v34 = vmul.f32 1.442695, %v544_v28  ;;  %v499_v39 = vmul.f32 %v495_v27, %v491_v20  ;;  %v252_v48 = vmul.f32 %v1508_v16, %v1373_v6  ;;  %v620_v63 = vld [vmem:[#allocation3 + $0x70] sm:$0xff]  ;;  %v627_v20 = vld [vmem:[#allocation3 + $0xa8] sm:$0xff] }
  0x5b   : > { %v1103_v24 = vpop.eup %1102  ;;  %461 = vrot.lane.b32.xlu1 %v452_v17, %s1237_s16  ;;  %1114 = vrcp.f32 %v553_v30  ;;  %v384_v12 = vmul.f32 1.442695, %v377_v33  ;;  %v392_v46 = vmul.f32 %v1101_v29, %v1479_v44  ;;  %v253_v52 = vmul.f32 %v1508_v16, %v1403_v14  ;;  %v622_v29 = vld [vmem:[#allocation3 + $0x80] sm:$0xff] }
  0x5c   : > { %v1105_v37 = vpop.eup %1104  ;;  %339 = vrot.lane.b32.xlu0 %v330_v1, %s1238_s17  ;;  %1116 = vpow2.f32 %v551_v34  ;;  %v513_v47 = vmul.f32 %v1103_v24, %v1453_v55  ;;  %v975_v53 = vpack.c.bf16 %v611_v36, %v607_v35  ;;  %v999_v5 = vpack.c.bf16 %v613_v41, %v609_v40  ;;  %v629_v1 = vld [vmem:[#allocation3 + $0xb8] sm:$0xff]  ;;  %v626_v30 = vld [vmem:[#allocation3 + $0xa0] sm:$0xff]  ;;  %v628_v34 = vld [vmem:[#allocation3 + $0xb0] sm:$0xff] }
  0x5d   : > { %1118 = vpow2.f32 %v445_v31  ;;  %v1107_v50 = vpop.eup %1106  ;;  %v1525_v51 = vmul.f32 %v1105_v37, %v1453_v55  ;;  %v506_v58 = vmul.f32 1.442695, %v499_v39  ;;  %v260_v59 = vadd.f32 %v1516_v7, %v252_v48  ;;  %v1539_v31 = vld [vmem:[#allocation3 + $0x90] sm:$0xff]  ;;  %v631_v35 = vld [vmem:[#allocation3 + $0xc8] sm:$0xff] }
  0x5e   : > { %1120 = vpow2.f32 %v384_v12  ;;  %v977_v60 = vpack.c.bf16 %v610_v43, %v606_v42  ;;  %v261_v3 = vadd.f32 %v1516_v7, %v253_v52  ;;  %976 = vmatprep.subr.bf16.mxu0 %v975_v53  ;;  %1000 = vmatprep.subr.bf16.mxu1 %v999_v5  ;;  %v1001_v17 = vpack.c.bf16 %v612_v13, %v608_v45  ;;  %v635_v36 = vld [vmem:[#allocation3 + $0xe8] sm:$0xff] }
  0x5f   : > { %341 = vrot.lane.b32.xlu1 %v331_v32, %s1238_s17  ;;  %v1529_v57 = vpop.eup %1108  ;;  %v254_v19 = vmul.f32 %v1508_v16, %v1423_v21  ;;  %v264_v23 = vmul.f32 -0.5, %v260_v59  ;;  %v979_v26 = vpack.c.bf16 %v619_v10, %v615_v8  ;;  %v1003_v27 = vpack.c.bf16 %v621_v54, %v617_v49  ;;  %v633_v10 = vld [vmem:[#allocation3 + $0xd8] sm:$0xff]  ;;  %v630_v54 = vld [vmem:[#allocation3 + $0xc0] sm:$0xff] }
  0x60   : > { %400 = vrot.lane.b32.xlu0 %v391_v38, %s1240_s25  ;;  %v554_v2 = vadd.f32 1.0, %v1529_v57  ;;  %978 = vmatpush1.bf16.msra.mxu0 %v977_v60  ;;  %v981_v28 = vpack.c.bf16 %v618_v56, %v614_v11  ;;  %v453_v24 = vmul.f32 %v1107_v50, %v1414_v18  ;;  %v265_v32 = vmul.f32 -0.5, %v261_v3  ;;  %v637_v49 = vld [vmem:[#allocation3 + $0xf8] sm:$0xff]  ;;  %v634_v11 = vld [vmem:[#allocation3 + $0xe0] sm:$0xff]  ;;  %v632_v56 = vld [vmem:[#allocation3 + $0xd0] sm:$0xff] }
  0x61   : > { %1002 = vmatpush1.bf16.msra.mxu1 %v1001_v17  ;;  %v262_v33 = vadd.f32 %v1516_v7, %v254_v19  ;;  %v268_v38 = vmul.f32 %v264_v23, %v260_v59  ;;  %980 = vmatprep.subr.bf16.mxu0 %v979_v26  ;;  %v1005_v39 = vpack.c.bf16 %v620_v63, %v616_v62  ;;  %v636_v62 = vld [vmem:[#allocation3 + $0xf0] sm:$0xff]  ;;  %v643_v63 = vld [vmem:[#allocation3 + $0x128] sm:$0xff]  ;;  %v645_v17 = vld [vmem:[#allocation3 + $0x138] sm:$0xff]  ;;  %vm566_vm1 = vcmp.ge.f32.partialorder %v1403_v14, 0.0 }
  0x62   : > { %1122 = vrcp.f32 %v554_v2  ;;  %v983_v40 = vpack.c.bf16 %v627_v20, %v1533_v0  ;;  %v269_v12 = vmul.f32 %v265_v32, %v261_v3  ;;  %1004 = vmatprep.subr.bf16.mxu1 %v1003_v27  ;;  %v1007_v45 = vpack.c.bf16 %v629_v1, %v625_v15  ;;  %v641_v3 = vld [vmem:[#allocation3 + $0x118] sm:$0xff]  ;;  %v638_v26 = vld [vmem:[#allocation3 + $0x100] sm:$0xff]  ;;  %v651_v32 = vld [vmem:[#allocation3 + $0x168] sm:$0xff] }
  0x63   : > { %402 = vrot.lane.b32.xlu1 %v392_v46, %s1240_s25  ;;  %v1544_v37 = vpop.eup %1110  ;;  %1124 = vpow2.f32 %v506_v58  ;;  %v266_v43 = vmul.f32 -0.5, %v262_v33  ;;  %v272_v46 = vmul.f32 1.442695, %v268_v38  ;;  %v985_v48 = vpack.c.bf16 %v626_v30, %v622_v29  ;;  %v642_v27 = vld [vmem:[#allocation3 + $0x120] sm:$0xff]  ;;  %v640_v29 = vld [vmem:[#allocation3 + $0x110] sm:$0xff] }
  0x64   : > { %522 = vrot.lane.b32.xlu0 %v513_v47, %s1239_s23  ;;  %v1113_v41 = vpop.eup %1112  ;;  %v555_v42 = vadd.f32 1.0, %v1544_v37  ;;  %982 = vmatpush1.bf16.msra.mxu0 %v981_v28  ;;  %v1009_v8 = vpack.c.bf16 %v628_v34, %v1539_v31  ;;  %v987_v47 = vpack.c.bf16 %v635_v36, %v631_v35  ;;  %v274_v53 = vmul.f32 1.442695, %v269_v12  ;;  %v644_v30 = vld [vmem:[#allocation3 + $0x130] sm:$0xff]  ;;  %v647_v31 = vld [vmem:[#allocation3 + $0x148] sm:$0xff]  ;;  %v653_v34 = vld [vmem:[#allocation3 + $0x178] sm:$0xff] }
  0x65   : > { %v1115_v13 = vpop.eup %1114  ;;  %v270_v5 = vmul.f32 %v266_v43, %v262_v33  ;;  %1006 = vmatpush1.bf16.msra.mxu1 %v1005_v39  ;;  %v332_v59 = vmul.f32 %v1113_v41, %v1426_v22  ;;  %984 = vmatprep.subr.bf16.mxu0 %v983_v40  ;;  %v1011_v2 = vpack.c.bf16 %v637_v49, %v633_v10  ;;  %v649_v33 = vld [vmem:[#allocation3 + $0x158] sm:$0xff]  ;;  %v1242_v39 = vmov 0.0  }
  0x66   : > { %v1550_v50 = vpop.eup %1116  ;;  %v569_v52 = vmul.f32 %v1115_v13, %v1503_v25  ;;  %1126 = vrcp.f32 %v555_v42  ;;  %1008 = vmatprep.subr.bf16.mxu1 %v1007_v45  ;;  %v989_v22 = vpack.c.bf16 %v634_v11, %v630_v54  ;;  %v1013_v15 = vpack.c.bf16 %v636_v62, %v632_v56  ;;  %731 = vmatprep.mubr.f32.mxu0 %v1242_v39  ;;  %v646_v42 = vld [vmem:[#allocation3 + $0x140] sm:$0xff] }
  0x67   : > { %524 = vrot.lane.b32.xlu1 %v1525_v51, %s1239_s23  ;;  %v1119_v58 = vpop.eup %1118  ;;  %v556_v60 = vadd.f32 1.0, %v1550_v50  ;;  %1128 = vpow2.f32 %v272_v46  ;;  %v639_v51 = vld [vmem:[#allocation3 + $0x108] sm:$0xff]  ;;  %v276_v0 = vmul.f32 1.442695, %v270_v5  ;;  %v255_v1 = vmul.f32 %v1508_v16, %v1465_v4  ;;  %v652_v46 = vld [vmem:[#allocation3 + $0x170] sm:$0xff]  ;;  %820 = vmatprep.mubr.f32.mxu1 %v1242_v39 }
  0x68   : > { %463 = vrot.lane.b32.xlu0 %v453_v24, %s1237_s16  ;;  %v573_v25 = vsel %vm565_vm0, %v1115_v13, %v569_v52  ;;  %1130 = vpow2.f32 %v274_v53  ;;  %v1121_v19 = vpop.eup %1120  ;;  %986 = vmatpush1.bf16.msra.mxu0 %v985_v48  ;;  %v991_v23 = vpack.c.bf16 %v643_v63, %v639_v51  ;;  %v1015_v28 = vpack.c.bf16 %v645_v17, %v641_v3 }
  0x69   : > { %v577_v20 = vmul.f32 %v573_v25, %v1373_v6  ;;  %1132 = vrcp.f32 %v556_v60  ;;  %1010 = vmatpush1.bf16.msra.mxu1 %v1009_v8  ;;  %988 = vmatprep.subr.bf16.mxu0 %v987_v47  ;;  %v454_v6 = vmul.f32 %v1119_v58, %v1414_v18  ;;  %v263_v16 = vadd.f32 %v1516_v7, %v255_v1  ;;  %v650_v7 = vld [vmem:[#allocation3 + $0x160] sm:$0xff] }
  0x6a   : > { %1134 = vpow2.f32 %v276_v0  ;;  %1012 = vmatprep.subr.bf16.mxu1 %v1011_v2  ;;  %v993_v38 = vpack.c.bf16 %v642_v27, %v638_v26  ;;  %v283_v18 = vrot.slane %v1388_v9, %v1494_v61  ;;  %v1017_v41 = vpack.c.bf16 %v644_v30, %v640_v29  ;;  %v648_v61 = vld [vmem:[#allocation3 + $0x150] sm:$0xff] }
  0x6b   : > { %585 = vrot.lane.b32.xlu1 %v577_v20, %s1241_s26  ;;  %v267_v40 = vmul.f32 -0.5, %v263_v16  ;;  %v1019_v43 = vpack.c.bf16 %v653_v34, %v649_v33  ;;  %vm567_vm2 = vcmp.ge.f32.partialorder %v1423_v21, 0.0  ;;  %v997_v47 = vpack.c.bf16 %v650_v7, %v646_v42 }
  0x6c   : > { %343 = vrot.lane.b32.xlu0 %v332_v59, %s1238_s17  ;;  %v1123_v24 = vpop.eup %1122  ;;  %990 = vmatpush1.bf16.msra.mxu0 %v989_v22  ;;  %v393_v49 = vmul.f32 %v1121_v19, %v1479_v44  ;;  %vm568_vm4 = vcmp.ge.f32.partialorder %v1465_v4, 0.0 }
  0x6d   : > { %v1125_v35 = vpop.eup %1124  ;;  %v570_v36 = vmul.f32 %v1123_v24, %v1529_v57  ;;  %1014 = vmatpush1.bf16.msra.mxu1 %v1013_v15  ;;  %992 = vmatprep.subr.bf16.mxu0 %v991_v23  ;;  %v995_v57 = vpack.c.bf16 %v651_v32, %v647_v31  ;;  %v271_v9 = vmul.f32 %v267_v40, %v263_v16 }
  0x6e   : > { %1016 = vmatprep.subr.bf16.mxu1 %v1015_v28  ;;  %v515_v59 = vmul.f32 %v1125_v35, %v1453_v55 }
  0x6f   : > { %465 = vrot.lane.b32.xlu1 %v454_v6, %s1237_s16  ;;  %v574_v12 = vsel %vm566_vm1, %v1123_v24, %v570_v36  ;;  %s1172_s16 = scalar_lea.vmem %s1171_s15, 4096 }
  0x70   : > { %v1127_v45 = vpop.eup %1126  ;;  %v578_v13 = vmul.f32 %v574_v12, %v1403_v14  ;;  %994 = vmatpush1.bf16.msra.mxu0 %v993_v38  ;;  %v278_v14 = vmul.f32 1.442695, %v271_v9  ;;  %p1174_p3 = scmp.lt.s32.totalorder %s1172_s16, %s1166_s13 }
  0x71   : > { %v1129_v48 = vpop.eup %1128  ;;  %v571_v8 = vmul.f32 %v1127_v45, %v1544_v37  ;;  %1018 = vmatpush1.bf16.msra.mxu1 %v1017_v41  ;;  %996 = vmatprep.subr.bf16.mxu0 %v995_v57  ;;  %v1021_v37 = vpack.c.bf16 %v652_v46, %v648_v61 }
  0x72   : > { %v1131_v10 = vpop.eup %1130  ;;  %587 = vrot.lane.b32.xlu0 %v578_v13, %s1241_s26  ;;  %v284_v52 = vmul.f32 %v1129_v48, %v283_v18  ;;  %1020 = vmatprep.subr.bf16.mxu1 %v1019_v43  ;;  %1136 = vpow2.f32 %v278_v14  ;;  %p1175_p4 = por %p1174_p3, %p1173_p2 }
  0x73   : > { %v1133_v53 = vpop.eup %1132  ;;  %v575_v5 = vsel %vm567_vm2, %v1127_v45, %v571_v8  ;;  %v285_v54 = vmul.f32 %v1131_v10, %v283_v18 }
  0x74   : > { %v1135_v11 = vpop.eup %1134  ;;  %v579_v56 = vmul.f32 %v575_v5, %v1423_v21  ;;  %v572_v58 = vmul.f32 %v1133_v53, %v1550_v50  ;;  %289 = vst.msk [vmem:[#allocation2] sm:$0xff] %vm288_vm3, %v284_v52  ;;  %998 = vmatpush1.bf16.msra.mxu0 %v997_v47  ;;  %p1176_p7 = pnand %p1175_p4, %p1169_p12 }
  0x75   : > { %290 = vst.msk [vmem:[#allocation2 + $0x8] sm:$0xff] %vm288_vm3, %v285_v54  ;;  %v286_v44 = vmul.f32 %v1135_v11, %v283_v18  ;;  %1022 = vmatpush1.bf16.msra.mxu1 %v1021_v37 }
  0x76   : > { %589 = vrot.lane.b32.xlu1 %v579_v56, %s1241_s26  ;;  %404 = vrot.lane.b32.xlu0 %v393_v49, %s1240_s25  ;;  %v576_v60 = vsel %vm568_vm4, %v1133_v53, %v572_v58 }
  0x77   : > { %v580_v21 = vmul.f32 %v576_v60, %v1465_v4  ;;  %291 = vst.msk [vmem:[#allocation2 + $0x10] sm:$0xff] %vm288_vm3, %v286_v44 }
  0x7a   : > { %526 = vrot.lane.b32.xlu0 %v515_v59, %s1239_s23  ;;  %591 = vrot.lane.b32.xlu1 %v580_v21, %s1241_s26 }
  0x7c   : > { %v1137_v50 = vpop.eup %1136 }
  0x7d   : > { %v287_v62 = vmul.f32 %v1137_v50, %v283_v18 }
  0x7f   : > { %292 = vst.msk [vmem:[#allocation2 + $0x18] sm:$0xff] %vm288_vm3, %v287_v62 }
  0xc5   : > { %v460_v51 = vpop.permute.xlu1 %459 }
  0xc6   : > { %v338_v63 = vpop.permute.xlu0 %337 }
  0xc7   : > { %350 = vst.msk [vmem:[#allocation2] sm:$0xff] %vm349_vm5, %v338_v63 }
  0xc9   : > { %v521_v55 = vpop.permute.xlu1 %520 }
  0xca   : > { %v399_v4 = vpop.permute.xlu0 %398 }
  0xcb   : > { %411 = vst.msk [vmem:[#allocation2] sm:$0xff] %vm410_vm6, %v399_v4 }
  0xcc   : > { %472 = vst.msk [vmem:[#allocation2] sm:$0xff] %vm471_vm7, %v460_v51 }
  0xcd   : > { %v462_v25 = vpop.permute.xlu1 %461  ;;  %533 = vst.msk [vmem:[#allocation2] sm:$0xff] %vm532_vm8, %v521_v55 }
  0xce   : > { %v340_v0 = vpop.permute.xlu0 %339 }
  0xcf   : > { %351 = vst.msk [vmem:[#allocation2 + $0x8] sm:$0xff] %vm349_vm5, %v340_v0 }
  0xd1   : > { %v342_v2 = vpop.permute.xlu1 %341 }
  0xd2   : > { %352 = vst.msk [vmem:[#allocation2 + $0x10] sm:$0xff] %vm349_vm5, %v342_v2  ;;  %v401_v3 = vpop.permute.xlu0 %400 }
  0xd3   : > { %412 = vst.msk [vmem:[#allocation2 + $0x8] sm:$0xff] %vm410_vm6, %v401_v3 }
  0xd4   : > { %473 = vst.msk [vmem:[#allocation2 + $0x8] sm:$0xff] %vm471_vm7, %v462_v25 }
  0xd5   : > { %v403_v17 = vpop.permute.xlu1 %402 }
  0xd6   : > { %413 = vst.msk [vmem:[#allocation2 + $0x10] sm:$0xff] %vm410_vm6, %v403_v17  ;;  %v523_v19 = vpop.permute.xlu0 %522 }
  0xd7   : > { %534 = vst.msk [vmem:[#allocation2 + $0x8] sm:$0xff] %vm532_vm8, %v523_v19 }
  0xd9   : > { %v525_v20 = vpop.permute.xlu1 %524 }
  0xda   : > { %v464_v22 = vpop.permute.xlu0 %463 }
  0xdb   : > { %474 = vst.msk [vmem:[#allocation2 + $0x10] sm:$0xff] %vm471_vm7, %v464_v22 }
  0xdc   : > { %535 = vst.msk [vmem:[#allocation2 + $0x10] sm:$0xff] %vm532_vm8, %v525_v20 }
  0xdd   : > { %v586_v15 = vpop.permute.xlu1 %585 }
  0xde   : > { %v344_v1 = vpop.permute.xlu0 %343  ;;  %598 = vst.msk [vmem:[#allocation2] sm:$0xff] %vm597_vm9, %v586_v15 }
  0xdf   : > { %353 = vst.msk [vmem:[#allocation2 + $0x18] sm:$0xff] %vm349_vm5, %v344_v1 }
  0xe1   : > { %v466_v23 = vpop.permute.xlu1 %465 }
  0xe4   : > { %v588_v26 = vpop.permute.xlu0 %587 }
  0xe5   : > { %599 = vst.msk [vmem:[#allocation2 + $0x8] sm:$0xff] %vm597_vm9, %v588_v26  ;;  %v602_v27 = vld [vmem:[#allocation2] sm:$0xff] }
  0xe6   : > { %959 = vmatmul.mubr.msk.f32.vlgmr.msra.gmra.mrb[0].mxu0 %vm654_vm10, %v602_v27  ;;  %963 = vmatmul.mubr.msk.f32.vlgmr.msra.gmra.mrb[0].mxu1 %vm654_vm10, %v602_v27 }
  0xe7   : > { %737 = vmatprep.mubr.f32.mxu0 %v1242_v39  ;;  %826 = vmatprep.mubr.f32.mxu1 %v1242_v39 }
  0xe8   : > { %v590_v6 = vpop.permute.xlu1 %589  ;;  %v405_v28 = vpop.permute.xlu0 %404 }
  0xe9   : > { %600 = vst.msk [vmem:[#allocation2 + $0x10] sm:$0xff] %vm597_vm9, %v590_v6 }
  0xea   : > { %414 = vst.msk [vmem:[#allocation2 + $0x18] sm:$0xff] %vm410_vm6, %v405_v28 }
  0xeb   : > { %475 = vst.msk [vmem:[#allocation2 + $0x18] sm:$0xff] %vm471_vm7, %v466_v23 }
  0xec   : > { %v527_v29 = vpop.permute.xlu0 %526  ;;  %v592_v30 = vpop.permute.xlu1 %591  ;;  %v603_v31 = vld [vmem:[#allocation2 + $0x8] sm:$0xff] }
  0xed   : > { %536 = vst.msk [vmem:[#allocation2 + $0x18] sm:$0xff] %vm532_vm8, %v527_v29  ;;  %960 = vmatmul.mubr.msk.f32.gmra.mrb[2].mxu0 %vm654_vm10, %v603_v31  ;;  %964 = vmatmul.mubr.msk.f32.gmra.mrb[2].mxu1 %vm654_vm10, %v603_v31 }
  0xee   : > { %601 = vst.msk [vmem:[#allocation2 + $0x18] sm:$0xff] %vm597_vm9, %v592_v30  ;;  %743 = vmatprep.mubr.f32.mxu0 %v1242_v39  ;;  %832 = vmatprep.mubr.f32.mxu1 %v1242_v39 }
  0xf0   : > { %v604_v24 = vld [vmem:[#allocation2 + $0x10] sm:$0xff] }
  0xf1   : > { %961 = vmatmul.mubr.msk.f32.gmra.mrb[4].mxu0 %vm654_vm10, %v604_v24  ;;  %965 = vmatmul.mubr.msk.f32.gmra.mrb[4].mxu1 %vm654_vm10, %v604_v24 }
  0xf2   : > { %749 = vmatprep.mubr.f32.mxu0 %v1242_v39  ;;  %838 = vmatprep.mubr.f32.mxu1 %v1242_v39 }
  0xf5   : > { %v605_v16 = vld [vmem:[#allocation2 + $0x18] sm:$0xff] }
  0xf6   : > { %962 = vmatmul.mubr.msk.f32.gmra.mrb[6].mxu0 %vm654_vm10, %v605_v16  ;;  %966 = vmatmul.mubr.msk.f32.gmra.mrb[6].mxu1 %vm654_vm10, %v605_v16 }
 0x1b9   : > { %v733_v32 = vpop.f32.mrb[0].mxu0  ;;  %v822_v33 = vpop.f32.mrb[0].mxu1 }
 0x1ba   : > { %845 = vst [vmem:[%s1635_s30] sm:$0xff] %v733_v32  ;;  %847 = vst [vmem:[%s1635_s30 + $0x10] sm:$0xff] %v822_v33  ;;  %v735_v34 = vpop.f32.mrb[1].mxu0  ;;  %v824_v35 = vpop.f32.mrb[1].mxu1 }
 0x1bb   : > { %846 = vst [vmem:[%s1635_s30 + $0x8] sm:$0xff] %v735_v34  ;;  %848 = vst [vmem:[%s1635_s30 + $0x18] sm:$0xff] %v824_v35 }
 0x1c0   : > { %v739_v36 = vpop.f32.mrb[2].mxu0  ;;  %v828_v38 = vpop.f32.mrb[2].mxu1 }
 0x1c1   : > { %849 = vst [vmem:[%s1635_s30 + $0x20] sm:$0xff] %v739_v36  ;;  %851 = vst [vmem:[%s1635_s30 + $0x30] sm:$0xff] %v828_v38  ;;  %v741_v39 = vpop.f32.mrb[3].mxu0  ;;  %v830_v18 = vpop.f32.mrb[3].mxu1 }
 0x1c2   : > { %850 = vst [vmem:[%s1635_s30 + $0x28] sm:$0xff] %v741_v39  ;;  %852 = vst [vmem:[%s1635_s30 + $0x38] sm:$0xff] %v830_v18 }
 0x1c4   : > { %v745_v40 = vpop.f32.mrb[4].mxu0  ;;  %v834_v41 = vpop.f32.mrb[4].mxu1 }
 0x1c5   : > { %853 = vst [vmem:[%s1635_s30 + $0x40] sm:$0xff] %v745_v40  ;;  %855 = vst [vmem:[%s1635_s30 + $0x50] sm:$0xff] %v834_v41  ;;  %v747_v42 = vpop.f32.mrb[5].mxu0  ;;  %v836_v7 = vpop.f32.mrb[5].mxu1 }
 0x1c6   : > { %854 = vst [vmem:[%s1635_s30 + $0x48] sm:$0xff] %v747_v42  ;;  %856 = vst [vmem:[%s1635_s30 + $0x58] sm:$0xff] %v836_v7 }
 0x1c9   : > { %v751_v12 = vpop.f32.mrb[6].mxu0  ;;  %v840_v57 = vpop.f32.mrb[6].mxu1 }
 0x1ca   : > { %857 = vst [vmem:[%s1635_s30 + $0x60] sm:$0xff] %v751_v12  ;;  %859 = vst [vmem:[%s1635_s30 + $0x70] sm:$0xff] %v840_v57  ;;  %v753_v43 = vpop.f32.mrb[7].mxu0  ;;  %v842_v45 = vpop.f32.mrb[7].mxu1 }
 0x1cb   : > { %858 = vst [vmem:[%s1635_s30 + $0x68] sm:$0xff] %v753_v43  ;;  %860 = vst [vmem:[%s1635_s30 + $0x78] sm:$0xff] %v842_v45 }
 0x1cc   : > { %1179 = shalt.err (!%p1176_p7)
}
 0x1cd   : > { %s1180_s17 = scalar_lea.hbm %s1654_s12, 2048  ;;  %s1184_s6 = scalar_lea.hbm %s1711_s5, 8192 }
 0x1ce   : > { %p1181_p8 = scmp.ne.s32.totalorder %s1654_s12, %s1180_s17  ;;  %p1185_p1 = scmp.lt.u32.totalorder %s1654_s12, %s1711_s5 }
 0x1cf   : > { %p1186_p0 = scmp.lt.u32.totalorder %s1184_s6, %s1180_s17  ;;  %p1188_p6 = scmp.lt.u32.totalorder %s1180_s17, %s1654_s12 }
 0x1d0   : > { %p1182_p11 = pnand %p1181_p8, %p1722_p9 }
 0x1d1   : > { %p1187_p5 = por %p1186_p0, %p1185_p1 }
 0x1d2   : > { %p1183_p13 = pneg %p1182_p11 }
 0x1d3   : > { %p1189_p10 = por %p1188_p6, %p1187_p5 }
 0x1d5   : > { %p1190_p12 = pnand %p1189_p10, %p1183_p13 }
 0x1d7   : > { %1193 = shalt.err (!%p1190_p12)
}
 0x1d8   : > { %s1244_s8 = smov 512  }
 0x1d9   : > { %1027 = dma.vmem_to_hbm [thread:$0]  (%p1722_p9), %s1656_s9, 2048, %s1654_s12, %s1664_s22, %s1244_s8, %s1244_s8, %s1240_s25  }
 0x1da PF: > { %p1039_p2 = scmp.ge.s32.totalorder %s1232_s21, 2  ;;  %s891_s10 = sand.u32 1, %s1220_s18  }
 0x1db   : > { %p1723_p3 = scmp.ne.s32.totalorder %s1716_s29, 0  ;;  %s892_s11 = scalar_lea.sflag [#allocation5], %s891_s10 }
 0x1dd   : > { %p1034_p4 = pnand %p1039_p2, %p1723_p3 }
 0x1df   : > { %1215 = dma.done.wait (!%p1034_p4), %s892_s11, 2048  }
 0x1e0   : > { %1217 = vsyncadd (!%p1034_p4), %s892_s11, 4294965248  ;;  %p16_p7 = scmp.ge.s32.totalorder %s1300_s24, 6   ;;  %s1724_s18 = smov %s1224_s19 }
 0x1e1   : > { %s1725_s19 = smov %s1228_s20  ;;  %s1726_s20 = smov %s1311_s27 }
 0x1e2   : > { %s1727_s21 = smov %s1300_s24  ;;  %18 = sbr.rel (!%p16_p7) target bundleno = 4 (0x4), region = 80 }
 0x1e9   :  { %897 = vsyncpa [#allocation4], 1 }
 0x1ea   :  { %899 = vsyncpa [#allocation4 + $0x1], 1 }
 0x1eb   :  { %900 = vsyncpa [#allocation5], 1 }
 0x1ec   :  { %902 = vsyncpa [#allocation5 + $0x1], 1 }

</bundles_post_ra>
